<compile_context>
chip_gen: v7x
topology: tpu7x:2x2x1
jax: 0.10.0
libtpu: 0.0.40
codegen_flags: <defaults>
</compile_context>

<pallas_src>
import math
from functools import partial

import jax
import jax.numpy as jnp
import numpy as np
from jax import lax
from jax.experimental import pallas as pl
from jax.experimental.pallas import tpu as pltpu


def _round_up(x, m):
    return ((x + m - 1) // m) * m


# --------------------------------------------------------------------------
# Fused Pallas kernel: one gather matmul, segmented renorm + KLD reductions,
# reparameterize, single lane-dense output slab.
# --------------------------------------------------------------------------
def _fused_vae_embed_kernel(ids_ref, w_ref, eps_ref, segT_ref, mn_ref,
                            out_ref, *, n_groups, z_total, slab_w):
    """
    ids_ref : (B, 1)         int32 VMEM  lookup ids (shared by every group)
    w_ref   : (V, 2*slab_w)  f32   VMEM  fused tables [mu slab || log_var slab]
    eps_ref : (B, slab_w)    f32   VMEM  N(0,1) noise (sampled in the wrapper)
    segT_ref: (Gp, slab_w)   f32   VMEM  0/1 group-membership mask (pad rows 0)
    mn_ref  : (1, Gp)        f32   VMEM  per-group max_norm = sqrt(D_g)
    out_ref : (B, slab_w)    f32   VMEM  [ z_0 | z_1 | ... | kld_0..kld_{G-1} | 0 ]
    """
    B = ids_ref.shape[0]
    V = w_ref.shape[0]
    Gp = segT_ref.shape[0]

    # ---- ONE one-hot MXU gather for every group's mu and log_var rows ----
    # (fine for tiny V; for large V switch to scalar-prefetch row-DMA gather)
    ids = ids_ref[...]                                               # (B, 1)
    onehot = (lax.broadcasted_iota(jnp.int32, (B, V), 1)
              == ids).astype(jnp.float32)                            # (B, V)
    gathered = jnp.dot(onehot, w_ref[...],
                       preferred_element_type=jnp.float32)           # (B, 2*slab_w)

    # Lane-aligned full-vreg slices, already in output column order.
    mu_raw = gathered[:, :slab_w]                                    # (B, slab_w)
    lv_raw = gathered[:, slab_w:]                                    # (B, slab_w)

    segT = segT_ref[...]                                             # (Gp, slab_w)
    mn = mn_ref[...]                                                 # (1, Gp)

    # Contract the slab (lane) axis of x with axis 1 of segT -> (B, Gp).
    seg_contract = (((1,), (1,)), ((), ()))

    def renorm(x):
        # torch.nn.Embedding(max_norm=sqrt(D)): rows with L2 norm > max_norm
        # are scaled by max_norm / (norm + 1e-7) at lookup time.
        # Per-group row norms via a segmented MXU reduction (no XLU reduce).
        sq = lax.dot_general(x * x, segT, seg_contract,
                             preferred_element_type=jnp.float32)     # (B, Gp)
        nrm = jnp.sqrt(sq)
        scale_g = jnp.where(nrm > mn, mn / (nrm + 1e-7), 1.0)        # (B, Gp)
        scale = jnp.dot(scale_g, segT,
                        preferred_element_type=jnp.float32)          # (B, slab_w)
        return x * scale

    mu = renorm(mu_raw)
    lv = renorm(lv_raw)

    std = jnp.exp(0.5 * lv)            # single EUP exp; exp(lv) == std * std
    var = std * std

    # ---- KLD: -0.5 * sum_D(1 + lv - mu^2 - exp(lv)), mean over batch. ----
    # The "+1 per group column" falls out of the segmented sum automatically.
    term = 1.0 + lv - mu * mu - var                                  # (B, slab_w)
    term_g = lax.dot_general(term, segT, seg_contract,
                             preferred_element_type=jnp.float32)     # (B, Gp)
    kld = jnp.mean(-0.5 * term_g, axis=0, keepdims=True)             # (1, Gp)

    # Scatter kld_g into output column z_total + g with a tiny MXU matmul.
    g_idx = lax.broadcasted_iota(jnp.int32, (Gp, slab_w), 0)
    c_idx = lax.broadcasted_iota(jnp.int32, (Gp, slab_w), 1)
    scat = jnp.logical_and(c_idx == z_total + g_idx,
                           g_idx < n_groups).astype(jnp.float32)     # (Gp, slab_w)
    kld_slab = jnp.dot(kld, scat,
                       preferred_element_type=jnp.float32)           # (1, slab_w)

    # ---- assemble ONE lane-dense slab, store with a single wide store ----
    col = lax.broadcasted_iota(jnp.int32, (1, slab_w), 1)
    z_mask = (col < z_total).astype(jnp.float32)                     # (1, slab_w)
    out_ref[...] = z_mask * (eps_ref[...] * std + mu) + kld_slab


# --------------------------------------------------------------------------
# Jitted forward: eps sampling + pallas_call + output slicing, all on device.
# --------------------------------------------------------------------------
@partial(jax.jit, static_argnames=("dims",))
def _vae_forward_jit(ids, fused_w, segT, mn, eps_key, *, dims):
    dims = tuple(int(d) for d in dims)
    B = ids.shape[0]
    G = len(dims)
    z_total = sum(dims)
    slab_w = fused_w.shape[1] // 2

    eps = jax.random.normal(eps_key, (B, slab_w), jnp.float32)

    vmem = pl.BlockSpec(memory_space=pltpu.MemorySpace.VMEM)
    slab = pl.pallas_call(
        partial(_fused_vae_embed_kernel, n_groups=G, z_total=z_total,
                slab_w=slab_w),
        out_shape=jax.ShapeDtypeStruct((B, slab_w), jnp.float32),
        in_specs=[vmem, vmem, vmem, vmem, vmem],
        out_specs=vmem,
        # Gridless on purpose: at B=8 a grid is pure per-step overhead.  When
        # B grows, tile the batch (multiple of 8) and mark the batch axis
        # "parallel" so v7x's two TensorCores split it.
    )(ids.reshape(B, 1).astype(jnp.int32), fused_w, eps, segT, mn)

    zs, klds, off = [], [], 0
    for g, d in enumerate(dims):
        zs.append(slab[:, off:off + d])
        klds.append(slab[0, z_total + g])
        off += d
    return tuple(zs), tuple(klds), eps


# --------------------------------------------------------------------------
# VAELikeEmbeddings wrapper (glue in plain JAX/Python)
# --------------------------------------------------------------------------
class VAELikeEmbeddingsPallas:
    def __init__(self, n_embeddings, embedding_dims, name_idx_mapping, key):
        assert len(embedding_dims) == n_embeddings
        self.name_idx_mapping = dict(name_idx_mapping)
        self.group_names = list(embedding_dims.keys())
        self.dims = tuple(int(embedding_dims[n]) for n in self.group_names)
        G = len(self.dims)
        vocab = len(name_idx_mapping)

        self.z_total = sum(self.dims)
        self.slab_w = _round_up(self.z_total + G, 128)   # lane-dense out width
        Gp = _round_up(G, 8)                             # sublane-pad groups

        self.z_offs, off = [], 0
        for d in self.dims:
            self.z_offs.append(off)
            off += d

        # Deterministic nn.Embedding-style init (see zero-init note in header).
        self.params = {}
        for i, name in enumerate(self.group_names):
            D = self.dims[i]
            kmu, klv = jax.random.split(jax.random.fold_in(key, i))
            self.params[name] = {
                "mu": jax.random.normal(kmu, (vocab, D), jnp.float32),
                "log_var": 0.1 * jax.random.normal(klv, (vocab, D),
                                                   jnp.float32),
            }

        # Slab-matched fused table (V, 2*slab_w):
        #   cols [0, slab_w)        : every group's mu at its z column offset
        #   cols [slab_w, 2*slab_w) : every group's log_var, same offsets
        mu_half = np.zeros((vocab, self.slab_w), np.float32)
        lv_half = np.zeros((vocab, self.slab_w), np.float32)
        segT = np.zeros((Gp, self.slab_w), np.float32)
        mn = np.ones((1, Gp), np.float32)
        for g, name in enumerate(self.group_names):
            o, D = self.z_offs[g], self.dims[g]
            mu_half[:, o:o + D] = np.asarray(self.params[name]["mu"])
            lv_half[:, o:o + D] = np.asarray(self.params[name]["log_var"])
            segT[g, o:o + D] = 1.0
            mn[0, g] = math.sqrt(D)
        self.fused_w = jnp.asarray(np.concatenate([mu_half, lv_half], axis=1))
        self.segT = jnp.asarray(segT)
        self.mn = jnp.asarray(mn)

    def _names_to_ids(self, names):
        # Host-side string -> id mapping; unavoidable Python work per call.
        return jnp.asarray([self.name_idx_mapping[n] for n in names],
                           dtype=jnp.int32)

    def __call__(self, names, eps_key, return_eps=False):
        """names: List[str] -> {group_name: (z (B, D_g), kld scalar)}"""
        # TODO(synk): Dict[str, List[str]] input (different ids per group)
        # would need per-group id columns instead of one shared gather.
        ids = self._names_to_ids(names)
        zs, klds, eps = _vae_forward_jit(ids, self.fused_w, self.segT,
                                         self.mn, eps_key, dims=self.dims)
        out = {name: (zs[g], klds[g])
               for g, name in enumerate(self.group_names)}
        if return_eps:
            eps_by_group = {
                name: eps[:, self.z_offs[g]:self.z_offs[g] + self.dims[g]]
                for g, name in enumerate(self.group_names)}
            return out, eps_by_group
        return out


# --------------------------------------------------------------------------
# Pure-JAX reference (for correctness check)
# --------------------------------------------------------------------------
def _ref_forward(ids, mu_w, lv_w, eps):
    max_norm = math.sqrt(mu_w.shape[1])

    def renorm(x):
        nrm = jnp.linalg.norm(x, axis=1, keepdims=True)
        return x * jnp.where(nrm > max_norm, max_norm / (nrm + 1e-7), 1.0)

    mu = renorm(mu_w[ids])
    lv = renorm(lv_w[ids])
    z = eps * jnp.exp(0.5 * lv) + mu
    kld = jnp.mean(-0.5 * jnp.sum(1.0 + lv - mu ** 2 - jnp.exp(lv), axis=1))
    return z, kld


if __name__ == "__main__":
    key = jax.random.PRNGKey(0)
    init_key, eps_key = jax.random.split(key)

    name_idx_mapping = {f"name_{i}": i for i in range(16)}      # vocab V=16
    embedding_dims = {"style": 32, "content": 64}               # n_embeddings=2

    model = VAELikeEmbeddingsPallas(
        n_embeddings=2,
        embedding_dims=embedding_dims,
        name_idx_mapping=name_idx_mapping,
        key=init_key,
    )

    names = ["name_3", "name_0", "name_7", "name_3",
             "name_12", "name_5", "name_9", "name_15"]          # batch B=8

    out, eps = model(names, eps_key, return_eps=True)
    jax.block_until_ready(out)

    # Correctness: eps is sampled outside the kernel, so z and kld can be
    # checked against a pure-JAX reference.  Tolerances leave headroom for
    # MXU multi-pass f32 rounding on real hardware (exact in interpret mode).
    ids = model._names_to_ids(names)
    for gname in model.group_names:
        p = model.params[gname]
        z_ref, kld_ref = _ref_forward(ids, p["mu"], p["log_var"], eps[gname])
        z_k, kld_k = out[gname]
        np.testing.assert_allclose(np.asarray(z_k), np.asarray(z_ref),
                                   rtol=1e-4, atol=1e-4)
        np.testing.assert_allclose(float(kld_k), float(kld_ref),
                                   rtol=1e-4, atol=1e-3)

    print("KERNEL_OK")
</pallas_src>

<mosaic_0001>
module attributes {stable_mosaic.version = 11 : i64} {
  func.func @_fused_vae_embed_kernel(%arg0: memref<8x1xi32, #tpu.memory_space<vmem>>, %arg1: memref<16x256xf32, #tpu.memory_space<vmem>>, %arg2: memref<8x128xf32, #tpu.memory_space<vmem>>, %arg3: memref<8x128xf32, #tpu.memory_space<vmem>>, %arg4: memref<1x8xf32, #tpu.memory_space<vmem>>, %arg5: memref<8x128xf32, #tpu.memory_space<vmem>>) attributes {dimension_semantics = [], scalar_prefetch = 0 : i64, scratch_operands = 0 : i64, tpu.core_type = #tpu.core_type<tc>} {
    %c0 = arith.constant 0 : index
    %c0_0 = arith.constant 0 : index
    %0 = vector.load %arg0[%c0, %c0_0] : memref<8x1xi32, #tpu.memory_space<vmem>>, vector<8x1xi32>
    %1 = tpu.iota {dimensions = array<i32: 1>} : vector<8x16xi32>
    %2 = vector.broadcast %0 : vector<8x1xi32> to vector<8x16xi32>
    %3 = arith.cmpi eq, %1, %2 : vector<8x16xi32>
    %4 = arith.extui %3 : vector<8x16xi1> to vector<8x16xi32>
    %5 = arith.sitofp %4 : vector<8x16xi32> to vector<8x16xf32>
    %c0_1 = arith.constant 0 : index
    %c0_2 = arith.constant 0 : index
    %6 = vector.load %arg1[%c0_1, %c0_2] : memref<16x256xf32, #tpu.memory_space<vmem>>, vector<16x256xf32>
    %cst = arith.constant dense<0.000000e+00> : vector<8x256xf32>
    %7 = tpu.matmul %5, %6, %cst {dimension_numbers = #tpu.dot_dimension_numbers<[1], [0], [0], [1], [0, 0, 1, 1], [], []>} : vector<8x16xf32>, vector<16x256xf32>, vector<8x256xf32> -> vector<8x256xf32>
    %8 = vector.extract_strided_slice %7 {offsets = [0, 0], sizes = [8, 128], strides = [1, 1]} : vector<8x256xf32> to vector<8x128xf32>
    %9 = vector.extract_strided_slice %7 {offsets = [0, 128], sizes = [8, 128], strides = [1, 1]} : vector<8x256xf32> to vector<8x128xf32>
    %c0_3 = arith.constant 0 : index
    %c0_4 = arith.constant 0 : index
    %10 = vector.load %arg3[%c0_3, %c0_4] : memref<8x128xf32, #tpu.memory_space<vmem>>, vector<8x128xf32>
    %c0_5 = arith.constant 0 : index
    %c0_6 = arith.constant 0 : index
    %11 = vector.load %arg4[%c0_5, %c0_6] : memref<1x8xf32, #tpu.memory_space<vmem>>, vector<1x8xf32>
    %12 = arith.mulf %8, %8 : vector<8x128xf32>
    %cst_7 = arith.constant dense<0.000000e+00> : vector<8x8xf32>
    %13 = tpu.matmul %12, %10, %cst_7 {dimension_numbers = #tpu.dot_dimension_numbers<[1], [1], [0], [0], [0, 0, 1, 0], [], []>} : vector<8x128xf32>, vector<8x128xf32>, vector<8x8xf32> -> vector<8x8xf32>
    %14 = math.sqrt %13 : vector<8x8xf32>
    %15 = vector.broadcast %11 : vector<1x8xf32> to vector<8x8xf32>
    %16 = arith.cmpf ogt, %14, %15 : vector<8x8xf32>
    %cst_8 = arith.constant 1.000000e-07 : f32
    %17 = vector.broadcast %cst_8 : f32 to vector<8x8xf32>
    %18 = arith.addf %14, %17 : vector<8x8xf32>
    %19 = vector.broadcast %11 : vector<1x8xf32> to vector<8x8xf32>
    %20 = arith.divf %19, %18 : vector<8x8xf32>
    %cst_9 = arith.constant 1.000000e+00 : f32
    %21 = vector.broadcast %cst_9 : f32 to vector<8x8xf32>
    %22 = arith.select %16, %20, %21 : vector<8x8xi1>, vector<8x8xf32>
    %cst_10 = arith.constant dense<0.000000e+00> : vector<8x128xf32>
    %23 = tpu.matmul %22, %10, %cst_10 {dimension_numbers = #tpu.dot_dimension_numbers<[1], [0], [0], [1], [0, 0, 1, 1], [], []>} : vector<8x8xf32>, vector<8x128xf32>, vector<8x128xf32> -> vector<8x128xf32>
    %24 = arith.mulf %8, %23 : vector<8x128xf32>
    %25 = arith.mulf %9, %9 : vector<8x128xf32>
    %cst_11 = arith.constant dense<0.000000e+00> : vector<8x8xf32>
    %26 = tpu.matmul %25, %10, %cst_11 {dimension_numbers = #tpu.dot_dimension_numbers<[1], [1], [0], [0], [0, 0, 1, 0], [], []>} : vector<8x128xf32>, vector<8x128xf32>, vector<8x8xf32> -> vector<8x8xf32>
    %27 = math.sqrt %26 : vector<8x8xf32>
    %28 = vector.broadcast %11 : vector<1x8xf32> to vector<8x8xf32>
    %29 = arith.cmpf ogt, %27, %28 : vector<8x8xf32>
    %cst_12 = arith.constant 1.000000e-07 : f32
    %30 = vector.broadcast %cst_12 : f32 to vector<8x8xf32>
    %31 = arith.addf %27, %30 : vector<8x8xf32>
    %32 = vector.broadcast %11 : vector<1x8xf32> to vector<8x8xf32>
    %33 = arith.divf %32, %31 : vector<8x8xf32>
    %cst_13 = arith.constant 1.000000e+00 : f32
    %34 = vector.broadcast %cst_13 : f32 to vector<8x8xf32>
    %35 = arith.select %29, %33, %34 : vector<8x8xi1>, vector<8x8xf32>
    %cst_14 = arith.constant dense<0.000000e+00> : vector<8x128xf32>
    %36 = tpu.matmul %35, %10, %cst_14 {dimension_numbers = #tpu.dot_dimension_numbers<[1], [0], [0], [1], [0, 0, 1, 1], [], []>} : vector<8x8xf32>, vector<8x128xf32>, vector<8x128xf32> -> vector<8x128xf32>
    %37 = arith.mulf %9, %36 : vector<8x128xf32>
    %cst_15 = arith.constant 5.000000e-01 : f32
    %38 = vector.broadcast %cst_15 : f32 to vector<8x128xf32>
    %39 = arith.mulf %38, %37 : vector<8x128xf32>
    %40 = math.exp %39 : vector<8x128xf32>
    %41 = arith.mulf %40, %40 : vector<8x128xf32>
    %cst_16 = arith.constant 1.000000e+00 : f32
    %42 = vector.broadcast %cst_16 : f32 to vector<8x128xf32>
    %43 = arith.addf %42, %37 : vector<8x128xf32>
    %44 = arith.mulf %24, %24 : vector<8x128xf32>
    %45 = arith.subf %43, %44 : vector<8x128xf32>
    %46 = arith.subf %45, %41 : vector<8x128xf32>
    %cst_17 = arith.constant dense<0.000000e+00> : vector<8x8xf32>
    %47 = tpu.matmul %46, %10, %cst_17 {dimension_numbers = #tpu.dot_dimension_numbers<[1], [1], [0], [0], [0, 0, 1, 0], [], []>} : vector<8x128xf32>, vector<8x128xf32>, vector<8x8xf32> -> vector<8x8xf32>
    %cst_18 = arith.constant -5.000000e-01 : f32
    %48 = vector.broadcast %cst_18 : f32 to vector<8x8xf32>
    %49 = arith.mulf %48, %47 : vector<8x8xf32>
    %cst_19 = arith.constant dense<0.000000e+00> : vector<8xf32>
    %50 = vector.multi_reduction <add>, %49, %cst_19 [0] : vector<8x8xf32> to vector<8xf32>
    %51 = vector.shape_cast %50 : vector<8xf32> to vector<1x8xf32>
    %cst_20 = arith.constant 8.000000e+00 : f32
    %52 = vector.broadcast %cst_20 : f32 to vector<1x8xf32>
    %53 = arith.divf %51, %52 : vector<1x8xf32>
    %54 = tpu.iota {dimensions = array<i32: 0>} : vector<8x128xi32>
    %55 = tpu.iota {dimensions = array<i32: 1>} : vector<8x128xi32>
    %c96_i32 = arith.constant 96 : i32
    %56 = vector.broadcast %c96_i32 : i32 to vector<8x128xi32>
    %57 = arith.addi %56, %54 : vector<8x128xi32>
    %58 = arith.cmpi eq, %55, %57 : vector<8x128xi32>
    %c2_i32 = arith.constant 2 : i32
    %59 = vector.broadcast %c2_i32 : i32 to vector<8x128xi32>
    %60 = arith.cmpi slt, %54, %59 : vector<8x128xi32>
    %61 = arith.andi %58, %60 : vector<8x128xi1>
    %62 = arith.extui %61 : vector<8x128xi1> to vector<8x128xi32>
    %63 = arith.sitofp %62 : vector<8x128xi32> to vector<8x128xf32>
    %cst_21 = arith.constant dense<0.000000e+00> : vector<1x128xf32>
    %64 = tpu.matmul %53, %63, %cst_21 {dimension_numbers = #tpu.dot_dimension_numbers<[1], [0], [0], [1], [0, 0, 1, 1], [], []>} : vector<1x8xf32>, vector<8x128xf32>, vector<1x128xf32> -> vector<1x128xf32>
    %65 = tpu.iota {dimensions = array<i32: 1>} : vector<1x128xi32>
    %c96_i32_22 = arith.constant 96 : i32
    %66 = vector.broadcast %c96_i32_22 : i32 to vector<1x128xi32>
    %67 = arith.cmpi slt, %65, %66 : vector<1x128xi32>
    %68 = arith.extui %67 : vector<1x128xi1> to vector<1x128xi32>
    %69 = arith.sitofp %68 : vector<1x128xi32> to vector<1x128xf32>
    %c0_23 = arith.constant 0 : index
    %c0_24 = arith.constant 0 : index
    %70 = vector.load %arg2[%c0_23, %c0_24] : memref<8x128xf32, #tpu.memory_space<vmem>>, vector<8x128xf32>
    %71 = arith.mulf %70, %40 : vector<8x128xf32>
    %72 = arith.addf %71, %24 : vector<8x128xf32>
    %73 = vector.broadcast %69 : vector<1x128xf32> to vector<8x128xf32>
    %74 = arith.mulf %73, %72 : vector<8x128xf32>
    %75 = vector.broadcast %64 : vector<1x128xf32> to vector<8x128xf32>
    %76 = arith.addf %74, %75 : vector<8x128xf32>
    %c0_25 = arith.constant 0 : index
    %c0_26 = arith.constant 0 : index
    %77 = vector.load %arg5[%c0_25, %c0_26] : memref<8x128xf32, #tpu.memory_space<vmem>>, vector<8x128xf32>
    tpu.vector_store %arg5[%c0_25, %c0_26], %76 {strides = array<i32>} : memref<8x128xf32, #tpu.memory_space<vmem>>, vector<8x128xf32>,
    return
  }
}

</mosaic_0001>

<bundles_post_ra>
// kernel: _vae_forward_jit.1
= control target key start
LH: loop header
LB: loop body
LE: loop exit
PB: predicated region body
PF: predicated region fallthrough
CT: control target
= control target key end

     0   :  { %v687_v0 = vmov 0   ;;  %v688_v4 = vmov 0.0   ;;  %v21_v10 = vlaneseq  ;;  %vm33_vm0 = vcmask 130048   ;;  %s780_s0 = inlined_call_operand.vmem [shape: s32[8,1], index: 0, kind: input, shape index: {}]   ;;  %s781_s1 = inlined_call_operand.vmem [shape: f32[16,256], index: 1, kind: input, shape index: {}]   ;;  %s782_s3 = inlined_call_operand.vmem [shape: f32[8,128], index: 3, kind: input, shape index: {}]   ;;  %s783_s4 = inlined_call_operand.vmem [shape: f32[1,8], index: 4, kind: input, shape index: {}]   ;;  %s784_s2 = inlined_call_operand.vmem [shape: f32[8,128], index: 2, kind: input, shape index: {}]   ;;  %s785_s5 = inlined_call_operand.vmem [shape: f32[8,128], index: 5, kind: output, shape index: {}]  }
   0x1   :  { %676 = vset.pattern.permute.xlu0 %v687_v0  ;;  %v20_v1 = vld [vmem:[%s780_s0] sm:$0xff]  ;;  %v30_v2 = vld [vmem:[%s781_s1 + $0x8] sm:$0xff]  ;;  %v32_v3 = vld [vmem:[%s781_s1 + $0x18] sm:$0xff]  ;;  %101 = vmatprep.mubr.f32.mxu0 %v688_v4  ;;  %vm689_vm2 = vmmov 0   ;;  %vm199_vm7 = vcmask 64512   ;;  %v690_v60 = vmov 1.0  }
   0x2   :  { %24 = vperm.xlu0 %676, %v20_v1   ;;  %v668_v5 = vpack.c.bf16 %v32_v3, %v30_v2  ;;  %v29_v6 = vld [vmem:[%s781_s1] sm:$0xff]  ;;  %v31_v7 = vld [vmem:[%s781_s1 + $0x10] sm:$0xff]  ;;  %638 = vmatprep.subr.mxu1 %v688_v4  ;;  %v744_v11 = vand.u32 127, %v21_v10  ;;  %v520_v58 = vshrl.u32 %v21_v10, 7 }
   0x3   :  { %v670_v8 = vpack.c.bf16 %v31_v7, %v29_v6  ;;  %v108_v9 = vld [vmem:[%s782_s3] sm:$0xff]  ;;  %640 = vmatprep.mubr.msk.f32.mxu1 %vm689_vm2, %v688_v4 }
   0x4   :  { %669 = vmatprep.subr.bf16.mxu0 %v668_v5  ;;  %639 = vmatpush3.xpose.msra.mxu1 %v108_v9  ;;  %v619_v34 = vld [vmem:[%s783_s4] ss:$0 sm:$0xff]  ;;  %v521_v59 = vadd.s32 96, %v520_v58  ;;  %vm523_vm11 = vcmp.lt.s32.totalorder %v520_v58, 2  ;;  %vm600_vm13 = vcmp.lt.s32.totalorder %v744_v11, 96 }
   0x5   :  { %671 = vmatpush1.bf16.msra.mxu0 %v670_v8  ;;  %648 = vmatprep.subr.mxu1 %v688_v4  ;;  %v603_v52 = vld [vmem:[%s784_s2] sm:$0xff]  ;;  %v625_v10 = vsel %vm600_vm13, 1.0, %v688_v4 }
   0x6   :  { %643 = vmatprep.subr.mxu0 %v688_v4  ;;  %vm522_vm10 = vcmp.eq.s32.totalorder %v744_v11, %v521_v59 }
   0x7   :  { %vm524_vm12 = vmand %vm522_vm10, %vm523_vm11 }
  0x81   :  { %v25_v12 = vpop.permute.xlu0 %24 }
  0x82   :  { %vm26_vm1 = vcmp.eq.s32.totalorder %v744_v11, %v25_v12 }
  0x83   :  { %v617_v13 = vsel %vm26_vm1, 1.0, %v688_v4 }
  0x84   :  { %618 = vmatmul.mubr.msk.f32.vlgmr.msra.gmra.mrb[0].mxu0 %vm33_vm0, %v617_v13 }
  0x85   :  { %644 = vmatpush3.msra.mxu0 %v108_v9  ;;  %645 = vmatprep.mubr.msk.f32.mxu0 %vm689_vm2, %v688_v4 }
  0x86   :  { %653 = vmatprep.subr.mxu0 %v688_v4 }
 0x157   :  { %v103_v14 = vpop.f32.mrb[0].mxu0 }
 0x158   :  { %v110_v15 = vmul.f32 %v103_v14, %v103_v14  ;;  %v105_v16 = vpop.f32.mrb[1].mxu0 }
 0x159   :  { %v274_v17 = vmul.f32 %v105_v16, %v105_v16 }
 0x15a   :  { %641 = vmatmul.mubr.f32.vlgmr.msra.gmra.mrb[0].mxu1 %v110_v15 }
 0x15b   :  { %649 = vmatpush3.xpose.msra.mxu1 %v108_v9  ;;  %650 = vmatprep.mubr.msk.f32.mxu1 %vm689_vm2, %v688_v4 }
 0x15c   :  { %658 = vmatprep.subr.mxu1 %v688_v4 }
 0x15e   :  { %651 = vmatmul.mubr.f32.vlgmr.msra.gmra.mrb[2].mxu1 %v274_v17 }
 0x15f   :  { %659 = vmatpush3.xpose.msra.mxu1 %v108_v9  ;;  %660 = vmatprep.mubr.msk.f32.mxu1 %vm689_vm2, %v688_v4 }
 0x22d   :  { %v177_v18 = vpop.f32.mrb[0].mxu1 }
 0x22e   :  { %677 = vrsqrt.f32 %v177_v18  ;;  %v642_v19 = vpop.f32.mrb[1].mxu1  ;;  %vm183_vm3 = vcmp.eq.f32.partialorder %v177_v18, inf  ;;  %v186_v24 = vand.u32 2147483648, %v177_v18  ;;  %vm185_vm4 = vcmp.eq.f32.partialorder %v177_v18, 0.0 }
 0x231   :  { %v341_v20 = vpop.f32.mrb[2].mxu1 }
 0x232   :  { %679 = vrsqrt.f32 %v341_v20  ;;  %v652_v21 = vpop.f32.mrb[3].mxu1  ;;  %vm347_vm5 = vcmp.eq.f32.partialorder %v341_v20, inf  ;;  %v350_v30 = vand.u32 2147483648, %v341_v20  ;;  %vm349_vm6 = vcmp.eq.f32.partialorder %v341_v20, 0.0 }
 0x238   :  { %v678_v22 = vpop.eup %677 }
 0x239   :  { %v182_v23 = vmul.f32 %v678_v22, %v177_v18 }
 0x23b   :  { %v184_v25 = vsel %vm183_vm3, %v177_v18, %v182_v23 }
 0x23c   :  { %v680_v26 = vpop.eup %679  ;;  %v187_v27 = vsel %vm185_vm4, %v186_v24, %v184_v25 }
 0x23d   :  { %v346_v28 = vmul.f32 %v680_v26, %v341_v20  ;;  %v195_v29 = vadd.f32 1e-07, %v187_v27  ;;  %vm194_vm8 = vcmp.gt.f32.partialorder %v187_v27, %v619_v34 }
 0x23f   :  { %681 = vrcp.f32 %v195_v29  ;;  %v348_v31 = vsel %vm347_vm5, %v341_v20, %v346_v28 }
 0x240   :  { %v351_v32 = vsel %vm349_vm6, %v350_v30, %v348_v31 }
 0x241   :  { %v353_v33 = vadd.f32 1e-07, %v351_v32  ;;  %vm352_vm9 = vcmp.gt.f32.partialorder %v351_v32, %v619_v34 }
 0x243   :  { %683 = vrcp.f32 %v353_v33 }
 0x249   :  { %v682_v35 = vpop.eup %681 }
 0x24a   :  { %v197_v36 = vmul.f32 %v682_v35, %v619_v34 }
 0x24c   :  { %v198_v37 = vsel %vm194_vm8, %v197_v36, 1.0 }
 0x24d   :  { %v684_v38 = vpop.eup %683  ;;  %646 = vmatmul.mubr.msk.f32.vlgmr.msra.gmra.mrb[2].mxu0 %vm199_vm7, %v198_v37 }
 0x24e   :  { %654 = vmatpush3.msra.mxu0 %v108_v9  ;;  %655 = vmatprep.mubr.msk.f32.mxu0 %vm689_vm2, %v688_v4  ;;  %v355_v39 = vmul.f32 %v684_v38, %v619_v34  ;;  %v609_v9 = vsub.s32 0, %v520_v58 }
 0x24f   :  { %663 = vmatprep.subr.mxu0 %v688_v4 }
 0x250   :  { %v356_v40 = vsel %vm352_vm9, %v355_v39, 1.0 }
 0x251   :  { %656 = vmatmul.mubr.msk.f32.vlgmr.msra.gmra.mrb[4].mxu0 %vm199_vm7, %v356_v40 }
 0x252   :  { %665 = vmatprep.mubr.msk.f32.mxu0 %vm689_vm2, %v688_v4  ;;  %664 = vmatpush3.msk.msra.mxu0 %vm524_vm12, %v690_v60 }
 0x320   :  { %v269_v41 = vpop.f32.mrb[2].mxu0 }
 0x321   :  { %v273_v42 = vmul.f32 %v269_v41, %v103_v14  ;;  %v647_v43 = vpop.f32.mrb[3].mxu0 }
 0x323   :  { %v436_v47 = vmul.f32 %v273_v42, %v273_v42 }
 0x324   :  { %v426_v44 = vpop.f32.mrb[4].mxu0 }
 0x325   :  { %v430_v45 = vmul.f32 %v426_v44, %v105_v16  ;;  %v657_v46 = vpop.f32.mrb[5].mxu0 }
 0x327   :  { %v431_v48 = vmul.f32 0.5, %v430_v45  ;;  %v435_v49 = vadd.f32 1.0, %v430_v45 }
 0x329   :  { %v432_v50 = vmul.f32 1.442695, %v431_v48  ;;  %v437_v51 = vsub.f32 %v435_v49, %v436_v47 }
 0x32b   :  { %685 = vpow2.f32 %v432_v50 }
 0x335   :  { %v686_v53 = vpop.eup %685 }
 0x336   :  { %v434_v54 = vmul.f32 %v686_v53, %v686_v53  ;;  %v604_v55 = vmul.f32 %v686_v53, %v603_v52 }
 0x338   :  { %v438_v56 = vsub.f32 %v437_v51, %v434_v54  ;;  %v605_v57 = vadd.f32 %v604_v55, %v273_v42 }
 0x33a   :  { %661 = vmatmul.mubr.f32.vlgmr.msra.gmra.mrb[4].mxu1 %v438_v56  ;;  %v606_v13 = vmul.f32 %v625_v10, %v605_v57 }
 0x40d   :  { %v505_v61 = vpop.f32.mrb[4].mxu1 }
 0x40e   :  { %v509_v62 = vmul.f32 -0.5, %v505_v61  ;;  %v662_v63 = vpop.f32.mrb[5].mxu1 }
 0x410   :  { %v510_v0 = vsel %vm199_vm7, %v509_v62, 0.0 }
 0x411   :  { %v511_v1 = vrot.slane %v510_v0, 4 }
 0x413   :  { %v512_v2 = vadd.f32 %v511_v1, %v510_v0 }
 0x415   :  { %v513_v3 = vrot.slane %v512_v2, 2 }
 0x417   :  { %v514_v5 = vadd.f32 %v513_v3, %v512_v2 }
 0x419   :  { %v515_v6 = vrot.slane %v514_v5, 1 }
 0x41b   :  { %v516_v7 = vadd.f32 %v515_v6, %v514_v5 }
 0x41d   :  { %v518_v8 = vmul.f32 0.125, %v516_v7 }
 0x41f   :  { %666 = vmatmul.mubr.msk.f32.vlgmr.msra.gmra.mrb[6].mxu0 %vm199_vm7, %v518_v8 }
 0x4f2   :  { %v596_v12 = vpop.f32.mrb[6].mxu0 }
 0x4f3   :  { %v610_v14 = vrot.slane %v596_v12, %v609_v9  ;;  %v667_v15 = vpop.f32.mrb[7].mxu0 }
 0x4f5   :  { %v611_v16 = vadd.f32 %v610_v14, %v606_v13 }
 0x4f7   :  { %612 = vst [vmem:[%s785_s5] sm:$0xff] %v611_v16 }

</bundles_post_ra>
